<compile_context>
chip_gen: v7x
topology: tpu7x:2x2x1
jax: 0.10.0
libtpu: 0.0.40
codegen_flags: <defaults>
</compile_context>

<pallas_src>
import functools

import jax
import jax.numpy as jnp
from jax.experimental import pallas as pl
from jax.experimental.pallas import tpu as pltpu

# ---- static model hyper-parameters (small, synthetic) ----------------------
VOCAB_SIZE = 50
EMBED_DIM = 32
FILTER_SIZES = (3, 4, 5)
NUM_FILTERS = (16, 16, 16)
NUM_CLASSES = 2
MAX_NORM = 5.0       # nn.Embedding(max_norm=5.0)
NPAD = 128           # lane-dense padded feature / class width


def _cnn_nlp_kernel(ids_ref, emb_ref, wpack_ref, bpack_ref, fcw_ref, fcb_ref,
                    vlen_ref, o_ref, *, B, L_out_pad, L_pad, fs_max):
    """Fused embedding-gather + renorm + conv1d(x3) + ReLU + max-pool + FC."""
    V, E = emb_ref.shape

    # ---- embedding lookup as one-hot MXU matmul (exact gather) -------------
    ids = ids_ref[...]                                        # (B*L_pad, 1) i32
    vocab_iota = jax.lax.broadcasted_iota(jnp.int32, (B * L_pad, V), 1)
    onehot = (vocab_iota == ids).astype(jnp.float32)          # (B*L_pad, V)
    emb = jnp.dot(onehot, emb_ref[...],
                  preferred_element_type=jnp.float32,
                  precision=jax.lax.Precision.HIGHEST)        # (B*L_pad, E)

    # max_norm=5.0 renormalization (forward semantics).
    norms = jnp.sqrt(jnp.sum(emb * emb, axis=-1, keepdims=True))
    scale = jnp.where(norms > MAX_NORM,
                      MAX_NORM / jnp.maximum(norms, 1e-12), 1.0)
    emb = emb * scale

    x = emb.reshape(B, L_pad, E)                              # (B, L_pad, E)

    # ---- im2col: one (B*L_out_pad, fs_max*E) slab --------------------------
    slabs = [x[:, k:k + L_out_pad, :] for k in range(fs_max)]  # static slices
    im2col = jnp.concatenate(slabs, axis=-1)                   # (B, Lo, fs*E)
    im2col = im2col.reshape(B * L_out_pad, fs_max * E)         # (B*Lo, 160)

    # ---- single packed conv matmul (all banks, all taps) -------------------
    conv = jnp.dot(im2col, wpack_ref[...],
                   preferred_element_type=jnp.float32)         # (B*Lo, 128)
    conv = conv.reshape(B, L_out_pad, NPAD)                    # (B, Lo, 128)

    # mask invalid trailing time positions per bank, then global max-pool
    t_iota = jax.lax.broadcasted_iota(jnp.int32, (L_out_pad, NPAD), 0)
    mask = jnp.where(t_iota < vlen_ref[...], 0.0, -1e30)       # (Lo, 128)
    pooled = jnp.max(conv + mask, axis=1)                      # (B, 128)

    # bias + ReLU after the pool (exact: bias time-invariant, ReLU monotone)
    feats = jnp.maximum(pooled + bpack_ref[...], 0.0)          # (B, 128)

    # Dropout is identity at inference time (eval-mode semantics).
    # TODO(synk): training-mode dropout RNG masking omitted (identity here).
    logits = jnp.dot(feats, fcw_ref[...],
                     preferred_element_type=jnp.float32) + fcb_ref[...]
    o_ref[...] = logits                                        # (B, 128)


def cnn_nlp_forward(emb_table, input_ids, conv_ws, conv_bs, fc_w, fc_b):
    """JAX wrapper: packs parameters lane-dense and calls the fused kernel."""
    B, L = input_ids.shape
    V, E = emb_table.shape
    fs_max = max(FILTER_SIZES)
    f_total = sum(NUM_FILTERS)
    assert f_total <= NPAD and NUM_CLASSES <= NPAD

    # pad l_out to a multiple of 8 sublanes; pad the time axis so every
    # fs_max-wide window (and the leading-dim reshapes) stay tile-aligned.
    l_out = L - min(FILTER_SIZES) + 1
    l_out_pad = -(-l_out // 8) * 8
    l_pad = -(-(l_out_pad + fs_max - 1) // 8) * 8

    # pad token ids with padding_idx=0; padded windows are masked anyway.
    ids_pad = jnp.pad(input_ids.astype(jnp.int32), ((0, 0), (0, l_pad - L)))
    ids_col = ids_pad.reshape(B * l_pad, 1)

    # ---- pack all conv banks into one (fs_max*E, 128) weight ---------------
    # NOTE: conv_ws[i] is stored as (fs, E, nf) -- a transpose of PyTorch's
    # (nf, E, fs) Conv1d weight; real checkpoints must permute (2, 1, 0).
    w_pack = jnp.zeros((fs_max * E, NPAD), jnp.float32)
    b_pack = jnp.zeros((1, NPAD), jnp.float32)
    vlen = jnp.full((1, NPAD), l_out_pad, jnp.int32)
    off = 0
    for fs, nf, w, b in zip(FILTER_SIZES, NUM_FILTERS, conv_ws, conv_bs):
        w_pack = w_pack.at[:fs * E, off:off + nf].set(w.reshape(fs * E, nf))
        b_pack = b_pack.at[0, off:off + nf].set(b.reshape(nf))
        vlen = vlen.at[0, off:off + nf].set(L - fs + 1)
        off += nf

    fcw_pack = jnp.zeros((NPAD, NPAD), jnp.float32)
    fcw_pack = fcw_pack.at[:f_total, :NUM_CLASSES].set(fc_w)
    fcb_pack = jnp.zeros((1, NPAD), jnp.float32)
    fcb_pack = fcb_pack.at[0, :NUM_CLASSES].set(fc_b.reshape(-1))

    kernel = functools.partial(_cnn_nlp_kernel, B=B, L_out_pad=l_out_pad,
                               L_pad=l_pad, fs_max=fs_max)
    vmem = pl.BlockSpec(memory_space=pltpu.MemorySpace.VMEM)

    out = pl.pallas_call(
        kernel,
        out_shape=jax.ShapeDtypeStruct((B, NPAD), jnp.float32),
        in_specs=[vmem] * 7,
        out_specs=vmem,
    )(ids_col, emb_table.astype(jnp.float32), w_pack, b_pack,
      fcw_pack, fcb_pack, vlen)

    return out[:, :NUM_CLASSES]


def init_params(key):
    """Deterministic synthetic parameters matching the PyTorch shapes."""
    keys = jax.random.split(key, 3 + 2 * len(FILTER_SIZES))

    # nn.Embedding: N(0,1), padding_idx=0 row zeroed.
    emb_table = jax.random.normal(keys[0], (VOCAB_SIZE, EMBED_DIM),
                                  dtype=jnp.float32)
    emb_table = emb_table.at[0].set(0.0)

    conv_ws, conv_bs = [], []
    for i, (fs, nf) in enumerate(zip(FILTER_SIZES, NUM_FILTERS)):
        bound = 1.0 / jnp.sqrt(EMBED_DIM * fs)
        # PyTorch Conv1d weight is (nf, E, fs); we store it as (fs, E, nf).
        w = jax.random.uniform(keys[1 + 2 * i], (fs, EMBED_DIM, nf),
                               minval=-bound, maxval=bound, dtype=jnp.float32)
        b = jax.random.uniform(keys[2 + 2 * i], (1, nf),
                               minval=-bound, maxval=bound, dtype=jnp.float32)
        conv_ws.append(w)
        conv_bs.append(b)

    f_total = sum(NUM_FILTERS)
    bound = 1.0 / jnp.sqrt(f_total)
    # PyTorch Linear weight is (C, F_total); we store it as (F_total, C).
    fc_w = jax.random.uniform(keys[-2], (f_total, NUM_CLASSES),
                              minval=-bound, maxval=bound, dtype=jnp.float32)
    fc_b = jax.random.uniform(keys[-1], (1, NUM_CLASSES),
                              minval=-bound, maxval=bound, dtype=jnp.float32)
    return emb_table, conv_ws, conv_bs, fc_w, fc_b


if __name__ == "__main__":
    key = jax.random.PRNGKey(0)
    pkey, dkey = jax.random.split(key)

    emb_table, conv_ws, conv_bs, fc_w, fc_b = init_params(pkey)

    batch, seq_len = 2, 16
    input_ids = jax.random.randint(dkey, (batch, seq_len), 0, VOCAB_SIZE,
                                   dtype=jnp.int32)

    logits = cnn_nlp_forward(emb_table, input_ids, conv_ws, conv_bs,
                             fc_w, fc_b)
    logits = jax.block_until_ready(logits)
    assert logits.shape == (batch, NUM_CLASSES)
    assert logits.dtype == jnp.float32
    print("KERNEL_OK")
</pallas_src>

<mosaic_0001>
module attributes {stable_mosaic.version = 11 : i64} {
  func.func @_cnn_nlp_kernel(%arg0: memref<48x1xi32, #tpu.memory_space<vmem>>, %arg1: memref<50x32xf32, #tpu.memory_space<vmem>>, %arg2: memref<160x128xf32, #tpu.memory_space<vmem>>, %arg3: memref<1x128xf32, #tpu.memory_space<vmem>>, %arg4: memref<128x128xf32, #tpu.memory_space<vmem>>, %arg5: memref<1x128xf32, #tpu.memory_space<vmem>>, %arg6: memref<1x128xi32, #tpu.memory_space<vmem>>, %arg7: memref<2x128xf32, #tpu.memory_space<vmem>>) attributes {dimension_semantics = [], scalar_prefetch = 0 : i64, scratch_operands = 0 : i64, tpu.core_type = #tpu.core_type<tc>} {
    %c0 = arith.constant 0 : index
    %c0_0 = arith.constant 0 : index
    %0 = vector.load %arg0[%c0, %c0_0] : memref<48x1xi32, #tpu.memory_space<vmem>>, vector<48x1xi32>
    %1 = tpu.iota {dimensions = array<i32: 1>} : vector<48x50xi32>
    %2 = vector.broadcast %0 : vector<48x1xi32> to vector<48x50xi32>
    %3 = arith.cmpi eq, %1, %2 : vector<48x50xi32>
    %4 = arith.extui %3 : vector<48x50xi1> to vector<48x50xi32>
    %5 = arith.sitofp %4 : vector<48x50xi32> to vector<48x50xf32>
    %c0_1 = arith.constant 0 : index
    %c0_2 = arith.constant 0 : index
    %6 = vector.load %arg1[%c0_1, %c0_2] : memref<50x32xf32, #tpu.memory_space<vmem>>, vector<50x32xf32>
    %cst = arith.constant dense<0.000000e+00> : vector<48x32xf32>
    %7 = tpu.matmul %5, %6, %cst {dimension_numbers = #tpu.dot_dimension_numbers<[1], [0], [0], [1], [0, 0, 1, 1], [], []>, precision = #tpu.contract_precision<fp32>} : vector<48x50xf32>, vector<50x32xf32>, vector<48x32xf32> -> vector<48x32xf32>
    %8 = arith.mulf %7, %7 : vector<48x32xf32>
    %cst_3 = arith.constant dense<0.000000e+00> : vector<48xf32>
    %9 = vector.multi_reduction <add>, %8, %cst_3 [1] : vector<48x32xf32> to vector<48xf32>
    %10 = vector.shape_cast %9 : vector<48xf32> to vector<48x1xf32>
    %11 = math.sqrt %10 : vector<48x1xf32>
    %cst_4 = arith.constant 5.000000e+00 : f32
    %12 = vector.broadcast %cst_4 : f32 to vector<48x1xf32>
    %13 = arith.cmpf ogt, %11, %12 : vector<48x1xf32>
    %cst_5 = arith.constant 9.99999996E-13 : f32
    %14 = vector.broadcast %cst_5 : f32 to vector<48x1xf32>
    %15 = arith.maximumf %11, %14 : vector<48x1xf32>
    %cst_6 = arith.constant 5.000000e+00 : f32
    %16 = vector.broadcast %cst_6 : f32 to vector<48x1xf32>
    %17 = arith.divf %16, %15 : vector<48x1xf32>
    %cst_7 = arith.constant 1.000000e+00 : f32
    %18 = vector.broadcast %cst_7 : f32 to vector<48x1xf32>
    %19 = arith.select %13, %17, %18 : vector<48x1xi1>, vector<48x1xf32>
    %20 = vector.broadcast %19 : vector<48x1xf32> to vector<48x32xf32>
    %21 = arith.mulf %7, %20 : vector<48x32xf32>
    %22 = vector.shape_cast %21 : vector<48x32xf32> to vector<2x24x32xf32>
    %23 = vector.extract_strided_slice %22 {offsets = [0, 0, 0], sizes = [2, 16, 32], strides = [1, 1, 1]} : vector<2x24x32xf32> to vector<2x16x32xf32>
    %24 = vector.extract_strided_slice %22 {offsets = [0, 1, 0], sizes = [2, 16, 32], strides = [1, 1, 1]} : vector<2x24x32xf32> to vector<2x16x32xf32>
    %25 = vector.extract_strided_slice %22 {offsets = [0, 2, 0], sizes = [2, 16, 32], strides = [1, 1, 1]} : vector<2x24x32xf32> to vector<2x16x32xf32>
    %26 = vector.extract_strided_slice %22 {offsets = [0, 3, 0], sizes = [2, 16, 32], strides = [1, 1, 1]} : vector<2x24x32xf32> to vector<2x16x32xf32>
    %27 = vector.extract_strided_slice %22 {offsets = [0, 4, 0], sizes = [2, 16, 32], strides = [1, 1, 1]} : vector<2x24x32xf32> to vector<2x16x32xf32>
    %28 = tpu.concatenate %23, %24, %25, %26, %27 in 2 : vector<2x16x32xf32>, vector<2x16x32xf32>, vector<2x16x32xf32>, vector<2x16x32xf32>, vector<2x16x32xf32> -> vector<2x16x160xf32>
    %29 = vector.shape_cast %28 : vector<2x16x160xf32> to vector<32x160xf32>
    %c0_8 = arith.constant 0 : index
    %c0_9 = arith.constant 0 : index
    %30 = vector.load %arg2[%c0_8, %c0_9] : memref<160x128xf32, #tpu.memory_space<vmem>>, vector<160x128xf32>
    %cst_10 = arith.constant dense<0.000000e+00> : vector<32x128xf32>
    %31 = tpu.matmul %29, %30, %cst_10 {dimension_numbers = #tpu.dot_dimension_numbers<[1], [0], [0], [1], [0, 0, 1, 1], [], []>} : vector<32x160xf32>, vector<160x128xf32>, vector<32x128xf32> -> vector<32x128xf32>
    %32 = vector.shape_cast %31 : vector<32x128xf32> to vector<2x16x128xf32>
    %33 = tpu.iota {dimensions = array<i32: 0>} : vector<16x128xi32>
    %c0_11 = arith.constant 0 : index
    %c0_12 = arith.constant 0 : index
    %34 = vector.load %arg6[%c0_11, %c0_12] : memref<1x128xi32, #tpu.memory_space<vmem>>, vector<1x128xi32>
    %35 = vector.broadcast %34 : vector<1x128xi32> to vector<16x128xi32>
    %36 = arith.cmpi slt, %33, %35 : vector<16x128xi32>
    %cst_13 = arith.constant 0.000000e+00 : f32
    %cst_14 = arith.constant -1.000000e+30 : f32
    %37 = vector.broadcast %cst_13 : f32 to vector<16x128xf32>
    %38 = vector.broadcast %cst_14 : f32 to vector<16x128xf32>
    %39 = arith.select %36, %37, %38 : vector<16x128xi1>, vector<16x128xf32>
    %40 = vector.shape_cast %39 : vector<16x128xf32> to vector<1x16x128xf32>
    %41 = vector.broadcast %40 : vector<1x16x128xf32> to vector<2x16x128xf32>
    %42 = arith.addf %32, %41 : vector<2x16x128xf32>
    %cst_15 = arith.constant dense<0xFF800000> : vector<2x128xf32>
    %43 = vector.multi_reduction <maximumf>, %42, %cst_15 [1] : vector<2x16x128xf32> to vector<2x128xf32>
    %c0_16 = arith.constant 0 : index
    %c0_17 = arith.constant 0 : index
    %44 = vector.load %arg3[%c0_16, %c0_17] : memref<1x128xf32, #tpu.memory_space<vmem>>, vector<1x128xf32>
    %45 = vector.broadcast %44 : vector<1x128xf32> to vector<2x128xf32>
    %46 = arith.addf %43, %45 : vector<2x128xf32>
    %cst_18 = arith.constant 0.000000e+00 : f32
    %47 = vector.broadcast %cst_18 : f32 to vector<2x128xf32>
    %48 = arith.maximumf %46, %47 : vector<2x128xf32>
    %c0_19 = arith.constant 0 : index
    %c0_20 = arith.constant 0 : index
    %49 = vector.load %arg4[%c0_19, %c0_20] : memref<128x128xf32, #tpu.memory_space<vmem>>, vector<128x128xf32>
    %cst_21 = arith.constant dense<0.000000e+00> : vector<2x128xf32>
    %50 = tpu.matmul %48, %49, %cst_21 {dimension_numbers = #tpu.dot_dimension_numbers<[1], [0], [0], [1], [0, 0, 1, 1], [], []>} : vector<2x128xf32>, vector<128x128xf32>, vector<2x128xf32> -> vector<2x128xf32>
    %c0_22 = arith.constant 0 : index
    %c0_23 = arith.constant 0 : index
    %51 = vector.load %arg5[%c0_22, %c0_23] : memref<1x128xf32, #tpu.memory_space<vmem>>, vector<1x128xf32>
    %52 = vector.broadcast %51 : vector<1x128xf32> to vector<2x128xf32>
    %53 = arith.addf %50, %52 : vector<2x128xf32>
    %c0_24 = arith.constant 0 : index
    %c0_25 = arith.constant 0 : index
    %54 = vector.load %arg7[%c0_24, %c0_25] : memref<2x128xf32, #tpu.memory_space<vmem>>, vector<2x128xf32>
    tpu.vector_store %arg7[%c0_24, %c0_25], %53 {strides = array<i32>} : memref<2x128xf32, #tpu.memory_space<vmem>>, vector<2x128xf32>,
    return
  }
}

</mosaic_0001>

<bundles_post_ra>
// kernel: tpu_custom_call.1
= control target key start
LH: loop header
LB: loop body
LE: loop exit
PB: predicated region body
PF: predicated region fallthrough
CT: control target
= control target key end

     0   :  { %12 = vsyncpa [#allocation3], 0  ;;  %s2338_s0 = inlined_call_operand.vmem [shape: s32[48,1], index: 0, kind: input, shape index: {}]   ;;  %s2339_s1 = inlined_call_operand.vmem [shape: f32[50,32], index: 1, kind: input, shape index: {}]   ;;  %s2340_s2 = inlined_call_operand.hbm [shape: f32[160,128], index: 2, kind: input, shape index: {}]   ;;  %s2341_s3 = inlined_call_operand.vmem [shape: f32[1,128], index: 3, kind: input, shape index: {}]   ;;  %s2342_s4 = inlined_call_operand.vmem [shape: f32[128,128], index: 4, kind: input, shape index: {}]   ;;  %s2343_s5 = inlined_call_operand.vmem [shape: f32[1,128], index: 5, kind: input, shape index: {}]   ;;  %s2344_s6 = inlined_call_operand.vmem [shape: s32[1,128], index: 6, kind: input, shape index: {}]   ;;  %s2345_s7 = inlined_call_operand.hbm [shape: f32[2,128], index: 7, kind: output, shape index: {}]  }
   0x1   :  { %13 = vsyncpa [#allocation4], 0  ;;  %s1882_s24 = smov [#allocation2]   ;;  %s1834_s28 = scalar_lea.hbm %s2340_s2, 2560 }
   0x2   :  { %s23_s25 = sshll.u32 %s1882_s24, 4  ;;  %p1835_p0 = scmp.ne.s32.totalorder %s2340_s2, %s1834_s28  ;;  %s24_s25 = int_to_ptr.vmem [resolvable:$true] %s23_s25 }
   0x3   :  { %p1838_p1 = scmp.lt.u32.totalorder %s1834_s28, %s2340_s2 }
   0x5   :  { %p1840_p2 = pnand %p1838_p1, %p1835_p0 }
   0x7   :  { %1843 = shalt.err (!%p1840_p2)
}
   0x8   :  { %s1844_s10 = scalar_lea.vmem %s24_s25, 2560  ;;  %p1849_p4 = scmp.lt.s32.totalorder %s24_s25, %s24_s25 }
   0x9   :  { %p1845_p3 = scmp.ne.s32.totalorder %s24_s25, %s1844_s10  ;;  %p1850_p5 = scmp.lt.s32.totalorder %s1844_s10, %s1844_s10 }
   0xb   :  { %p1851_p6 = por %p1850_p5, %p1849_p4 }
   0xd   :  { %p1852_p7 = pnand %p1851_p6, %p1845_p3 }
   0xf   :  { %1855 = shalt.err (!%p1852_p7)
}
  0x10   :  { %s1883_s11 = smov 128   ;;  %s1884_s12 = smov 8  }
  0x11   :  { %29 = dma.hbm_to_vmem [thread:$0]  %s2340_s2, 2560, %s24_s25, [#allocation3], %s1883_s11, %s1883_s11, %s1884_s12  }
  0x12   :  { %1878 = dma.done.wait [#allocation3], 2560  }
  0x13   :  { %1879 = vsyncadd [#allocation3], 4294964736  ;;  %v1885_v0 = vmov 0   ;;  %v43_v1 = vld [vmem:[%s2338_s0 + $0x10] sm:$0xff]  ;;  %v41_v2 = vld [vmem:[%s2338_s0] sm:$0xff]  ;;  %vm111_vm0 = vcmask 1041408   ;;  %v47_v62 = vlaneseq }
  0x14   :  { %1794 = vset.pattern.permute.xlu1 %v1885_v0  ;;  %1793 = vset.pattern.permute.xlu0 %v1885_v0  ;;  %v44_v3 = vld [vmem:[%s2338_s0 + $0x18] sm:$0xff]  ;;  %v42_v4 = vld [vmem:[%s2338_s0 + $0x8] sm:$0xff]  ;;  %v85_v5 = vld [vmem:[%s2339_s1] sm:$0xff]  ;;  %vm92_vm1 = vcmask 408576   ;;  %vm860_vm8 = vcmask 261120   ;;  %s1890_s17 = smov 96  }
  0x15   :  { %56 = vperm.xlu1 %1794, %v43_v1   ;;  %50 = vperm.xlu0 %1793, %v41_v2   ;;  %v86_v6 = vld [vmem:[%s2339_s1 + $0x8] sm:$0xff]  ;;  %v87_v7 = vld [vmem:[%s2339_s1 + $0x10] sm:$0xff]  ;;  %v116_v8 = vand.u32 4294901760, %v85_v5  ;;  %v88_v10 = vld [vmem:[%s2339_s1 + $0x18] sm:$0xff]  ;;  %v48_v63 = vand.u32 127, %v47_v62  ;;  %v1886_v2 = vmov 0.0  }
  0x16   :  { %v119_v9 = vand.u32 4294901760, %v86_v6  ;;  %v122_v11 = vand.u32 4294901760, %v87_v7  ;;  %v89_v12 = vld [vmem:[%s2339_s1 + $0x20] sm:$0xff]  ;;  %v90_v13 = vld [vmem:[%s2339_s1 + $0x28] sm:$0xff]  ;;  %v125_v14 = vand.u32 4294901760, %v88_v10  ;;  %s1893_s27 = smov [#allocation5]  }
  0x17   :  { %v128_v15 = vand.u32 4294901760, %v89_v12  ;;  %v131_v16 = vand.u32 4294901760, %v90_v13  ;;  %v91_v17 = vld [vmem:[%s2339_s1 + $0x30] sm:$0x3]  ;;  %v249_v19 = vsub.f32 %v85_v5, %v116_v8  ;;  %v46_v22 = vld [vmem:[%s2338_s0 + $0x28] sm:$0xff]  ;;  %v45_v23 = vld [vmem:[%s2338_s0 + $0x20] sm:$0xff] }
  0x18   :  { %v1979_v18 = vpack.c.bf16 %v119_v9, %v116_v8  ;;  %v256_v20 = vsub.f32 %v86_v6, %v119_v9  ;;  %v113_v21 = vsel %vm111_vm0, %v91_v17, 0  ;;  %v1988_v24 = vpack.c.bf16 %v125_v14, %v122_v11  ;;  %s1888_s0 = smov 64   ;;  %s1889_s1 = smov 32  }
  0x19   :  { %59 = vperm.xlu1 %1794, %v44_v3   ;;  %53 = vperm.xlu0 %1793, %v42_v4   ;;  %v263_v25 = vsub.f32 %v87_v7, %v122_v11  ;;  %v270_v26 = vsub.f32 %v88_v10, %v125_v14  ;;  %v250_v27 = vand.u32 4294901760, %v249_v19  ;;  %v277_v29 = vsub.f32 %v89_v12, %v128_v15  ;;  %s1317_s28 = sshll.u32 %s1893_s27, 4  ;;  %s1318_s28 = int_to_ptr.vmem [resolvable:$true] %s1317_s28 }
  0x1a   :  { %v257_v28 = vand.u32 4294901760, %v256_v20  ;;  %v284_v30 = vsub.f32 %v90_v13, %v131_v16  ;;  %1626 = vmatprep.subr.bf16.mxu1 %v1979_v18  ;;  %v1991_v33 = vpack.c.bf16 %v131_v16, %v128_v15  ;;  %v1994_v34 = vand.u32 4294901760, %v113_v21  ;;  %p1861_p9 = scmp.lt.s32.totalorder %s1318_s28, %s1318_s28 }
  0x1b   :  { %v264_v31 = vand.u32 4294901760, %v263_v25  ;;  %v271_v32 = vand.u32 4294901760, %v270_v26  ;;  %1628 = vmatpush3.bf16.msra.mxu1 %v1979_v18  ;;  %v251_v35 = vsub.f32 %v249_v19, %v250_v27  ;;  %v278_v37 = vand.u32 4294901760, %v277_v29 }
  0x1c   :  { %v258_v36 = vsub.f32 %v256_v20, %v257_v28  ;;  %v285_v38 = vand.u32 4294901760, %v284_v30  ;;  %v1997_v41 = vsub.f32 %v113_v21, %v1994_v34  ;;  %1630 = vmatprep.subr.bf16.mxu1 %v1988_v24  ;;  %v2000_v42 = vpack.c.bf16 %v270_v26, %v263_v25 }
  0x1d   :  { %65 = vperm.xlu1 %1794, %v46_v22   ;;  %62 = vperm.xlu0 %1793, %v45_v23   ;;  %v265_v39 = vsub.f32 %v263_v25, %v264_v31  ;;  %v272_v40 = vsub.f32 %v270_v26, %v271_v32  ;;  %v252_v43 = vand.u32 4294901760, %v251_v35  ;;  %v279_v45 = vsub.f32 %v277_v29, %v278_v37 }
  0x1e   :  { %v259_v44 = vand.u32 4294901760, %v258_v36  ;;  %v286_v46 = vsub.f32 %v284_v30, %v285_v38  ;;  %v2003_v49 = vand.u32 4294901760, %v1997_v41  ;;  %v2007_v53 = vpack.c.bf16 %v284_v30, %v277_v29 }
  0x1f   :  { %v266_v47 = vand.u32 4294901760, %v265_v39  ;;  %v273_v48 = vand.u32 4294901760, %v272_v40  ;;  %1632 = vmatpush3.bf16.msra.mxu1 %v1988_v24  ;;  %v280_v51 = vand.u32 4294901760, %v279_v45  ;;  %v1649_v58 = vpack.c.bf16 %v256_v20, %v249_v19 }
  0x20   :  { %v1637_v50 = vpack.c.bf16 %v259_v44, %v252_v43  ;;  %v287_v52 = vand.u32 4294901760, %v286_v46  ;;  %1634 = vmatprep.subr.bf16.mxu1 %v1991_v33  ;;  %v293_v56 = vsub.f32 %v1997_v41, %v2003_v49  ;;  %v2014_v59 = vpack.c.bf16 %v257_v28, %v250_v27 }
  0x21   :  { %v1641_v54 = vpack.c.bf16 %v273_v48, %v266_v47  ;;  %v2016_v60 = vpack.c.bf16 %v271_v32, %v264_v31  ;;  %v2018_v61 = vpack.c.bf16 %v285_v38, %v278_v37 }
  0x22   :  { %1638 = vmatprep.subr.bf16.mxu0 %v1637_v50  ;;  %v1645_v55 = vpack.c.bf16 %v287_v52, %v280_v51  ;;  %v294_v57 = vand.u32 4294901760, %v293_v56 }
  0x23   :  { %1640 = vmatpush3.bf16.msra.mxu0 %v1637_v50  ;;  %1636 = vmatpush3.bf16.msra.mxu1 %v1991_v33 }
  0x24   :  { %1642 = vmatprep.subr.bf16.mxu0 %v1641_v54  ;;  %1464 = vmatprep.subr.mxu1 %v1994_v34 }
  0x27   :  { %1644 = vmatpush3.bf16.msra.mxu0 %v1641_v54  ;;  %1465 = vmatpush3.msra.mxu1 %v1994_v34 }
  0x28   :  { %1646 = vmatprep.subr.bf16.mxu0 %v1645_v55 }
  0x2b   :  { %1648 = vmatpush3.bf16.msra.mxu0 %v1645_v55 }
  0x2c   :  { %1487 = vmatprep.subr.mxu0 %v294_v57 }
  0x2f   :  { %1488 = vmatpush3.msra.mxu0 %v294_v57 }
  0x30   :  { %1650 = vmatprep.subr.bf16.mxu0 %v1649_v58 }
  0x94   :  { %v57_v0 = vpop.permute.xlu1 %56  ;;  %v51_v1 = vpop.permute.xlu0 %50 }
  0x95   :  { %vm69_vm2 = vcmp.eq.s32.totalorder %v48_v63, %v57_v0  ;;  %vm67_vm3 = vcmp.eq.s32.totalorder %v48_v63, %v51_v1 }
  0x96   :  { %v2022_v3 = vsel %vm69_vm2, 1.0, %v1886_v2  ;;  %v2025_v4 = vsel %vm67_vm3, 1.0, %v1886_v2 }
  0x97   :  { %v100_v5 = vsel %vm92_vm1, %v2022_v3, 0  ;;  %1489 = vmatprep.mubr.msk.f32.mxu0 %vm92_vm1, %v2025_v4  ;;  %v94_v6 = vsel %vm92_vm1, %v2025_v4, 0 }
  0x98   :  { %v2033_v7 = vsub.f32 %v100_v5, %v100_v5  ;;  %v60_v8 = vpop.permute.xlu1 %59  ;;  %v54_v9 = vpop.permute.xlu0 %53  ;;  %v2035_v10 = vsub.f32 %v94_v6, %v94_v6 }
  0x99   :  { %vm70_vm4 = vcmp.eq.s32.totalorder %v48_v63, %v60_v8  ;;  %vm68_vm5 = vcmp.eq.s32.totalorder %v48_v63, %v54_v9 }
  0x9a   :  { %v2038_v11 = vsel %vm70_vm4, 1.0, %v1886_v2  ;;  %v2041_v12 = vsel %vm68_vm5, 1.0, %v1886_v2  ;;  %v189_v13 = vand.u32 4294901760, %v2035_v10  ;;  %v209_v14 = vand.u32 4294901760, %v2033_v7 }
  0x9b   :  { %v103_v15 = vsel %vm92_vm1, %v2038_v11, 0  ;;  %v97_v16 = vsel %vm92_vm1, %v2041_v12, 0  ;;  %1490 = vmatmul.mubr.msk.f32.vlgmr.msra.gmra.mrb[0].mxu0 %vm92_vm1, %v2041_v12 }
  0x9c   :  { %v2051_v17 = vsub.f32 %v103_v15, %v103_v15  ;;  %v198_v19 = vsub.f32 %v97_v16, %v97_v16  ;;  %1652 = vmatpush3.bf16.msra.mxu0 %v1649_v58  ;;  %v66_v20 = vpop.permute.xlu1 %65  ;;  %v63_v21 = vpop.permute.xlu0 %62  ;;  %1492 = vmatprep.mubr.msk.f32.mxu0 %vm92_vm1, %v2022_v3  ;;  %v190_v22 = vsub.f32 %v2035_v10, %v189_v13  ;;  %v1060_v16 = vld [vmem:[#allocation2 + $0x18] sm:$0xff] }
  0x9d   :  { %vm72_vm6 = vcmp.eq.s32.totalorder %v48_v63, %v66_v20  ;;  %vm71_vm7 = vcmp.eq.s32.totalorder %v48_v63, %v63_v21  ;;  %1654 = vmatprep.subr.bf16.mxu0 %v2000_v42  ;;  %v210_v23 = vsub.f32 %v2033_v7, %v209_v14  ;;  %v1062_v20 = vld [vmem:[#allocation2 + $0x28] sm:$0xff] }
  0x9e   :  { %v2061_v25 = vsel %vm72_vm6, 1.0, %v1886_v2  ;;  %v2064_v26 = vsel %vm71_vm7, 1.0, %v1886_v2  ;;  %v191_v27 = vand.u32 4294901760, %v190_v22  ;;  %v199_v28 = vand.u32 4294901760, %v198_v19  ;;  %v1063_v22 = vld [vmem:[#allocation2 + $0x30] sm:$0xff] }
  0x9f   :  { %v109_v29 = vsel %vm92_vm1, %v2061_v25, 0  ;;  %v106_v30 = vsel %vm92_vm1, %v2064_v26, 0  ;;  %1493 = vmatmul.mubr.msk.f32.gmra.mrb[2].mxu0 %vm92_vm1, %v2038_v11  ;;  %v219_v31 = vand.u32 4294901760, %v2051_v17  ;;  %v211_v37 = vand.u32 4294901760, %v210_v23  ;;  %v1064_v23 = vld [vmem:[#allocation2 + $0x38] sm:$0xff] }
  0xa0   :  { %v238_v32 = vsub.f32 %v109_v29, %v109_v29  ;;  %v228_v35 = vsub.f32 %v106_v30, %v106_v30  ;;  %1656 = vmatpush3.bf16.msra.mxu0 %v2000_v42  ;;  %1466 = vmatprep.mubr.f32.mxu1 %v191_v27  ;;  %v200_v36 = vsub.f32 %v198_v19, %v199_v28  ;;  %v1066_v27 = vld [vmem:[#allocation2 + $0x48] sm:$0xff]  ;;  %v1067_v29 = vld [vmem:[#allocation2 + $0x50] sm:$0xff]  ;;  %v1068_v30 = vld [vmem:[#allocation2 + $0x58] sm:$0xff]  ;;  %vm1032_vm7 = vcmask 1043456  }
  0xa1   :  { %1495 = vmatprep.mubr.msk.f32.mxu0 %vm92_vm1, %v2064_v26  ;;  %1658 = vmatprep.subr.bf16.mxu0 %v2007_v53  ;;  %v220_v39 = vsub.f32 %v2051_v17, %v219_v31 }
  0xa2   :  { %v201_v38 = vand.u32 4294901760, %v200_v36  ;;  %v229_v40 = vand.u32 4294901760, %v228_v35  ;;  %v239_v43 = vand.u32 4294901760, %v238_v32 }
  0xa3   :  { %1496 = vmatmul.mubr.msk.f32.gmra.mrb[4].mxu0 %vm92_vm1, %v2061_v25  ;;  %v221_v44 = vand.u32 4294901760, %v220_v39 }
  0xa4   :  { %1660 = vmatpush3.bf16.msra.mxu0 %v2007_v53  ;;  %1467 = vmatmul.mubr.f32.vlgmr.msra.gmra.mrb[0].mxu1 %v201_v38  ;;  %v230_v42 = vsub.f32 %v228_v35, %v229_v40  ;;  %v240_v46 = vsub.f32 %v238_v32, %v239_v43  ;;  %v1072_v38 = vld [vmem:[#allocation2 + $0x78] sm:$0xff] }
  0xa5   :  { %1512 = vmatprep.mubr.f32.mxu0 %v2035_v10  ;;  %1469 = vmatprep.mubr.f32.mxu1 %v211_v37  ;;  %v1071_v37 = vld [vmem:[#allocation2 + $0x70] sm:$0xff] }
  0xa6   :  { %1510 = vmatprep.subr.mxu0 %v1997_v41  ;;  %v231_v45 = vand.u32 4294901760, %v230_v42  ;;  %v241_v47 = vand.u32 4294901760, %v240_v46  ;;  %v1719_v39 = vpack.c.bf16 %v1072_v38, %v1071_v37 }
  0xa8   :  { %1511 = vmatpush3.msra.mxu0 %v1997_v41  ;;  %1470 = vmatmul.mubr.f32.gmra.mrb[2].mxu1 %v221_v44 }
  0xa9   :  { %1513 = vmatmul.mubr.f32.vlgmr.msra.gmra.mrb[0].mxu0 %v198_v19  ;;  %1662 = vmatprep.subr.bf16.mxu0 %v1979_v18  ;;  %v1061_v19 = vld [vmem:[#allocation2 + $0x20] sm:$0xff] }
  0xaa   :  { %1472 = vmatprep.mubr.f32.mxu1 %v231_v45  ;;  %1515 = vmatprep.mubr.f32.mxu0 %v2033_v7  ;;  %v1704_v21 = vpack.c.bf16 %v1062_v20, %v1061_v19 }
  0xab   :  { %1664 = vmatpush3.bf16.msra.mxu0 %v1979_v18 }
  0xac   :  { %1473 = vmatmul.mubr.f32.gmra.mrb[4].mxu1 %v241_v47  ;;  %1666 = vmatprep.subr.bf16.mxu0 %v1988_v24 }
  0xad   :  { %1516 = vmatmul.mubr.f32.gmra.mrb[2].mxu0 %v2051_v17 }
  0xae   :  { %1518 = vmatprep.mubr.f32.mxu0 %v228_v35  ;;  %v1070_v35 = vld [vmem:[#allocation2 + $0x68] sm:$0xff] }
  0xaf   :  { %1668 = vmatpush3.bf16.msra.mxu0 %v1988_v24 }
  0xb0   :  { %1670 = vmatprep.subr.bf16.mxu0 %v1991_v33 }
  0xb1   :  { %1519 = vmatmul.mubr.f32.gmra.mrb[4].mxu0 %v238_v32  ;;  %v1069_v32 = vld [vmem:[#allocation2 + $0x60] sm:$0xff] }
  0xb2   :  { %1535 = vmatprep.mubr.f32.mxu0 %v189_v13  ;;  %v1059_v13 = vld [vmem:[#allocation2 + $0x10] sm:$0xff]  ;;  %v1716_v36 = vpack.c.bf16 %v1070_v35, %v1069_v32 }
  0xb3   :  { %1672 = vmatpush3.bf16.msra.mxu0 %v1991_v33  ;;  %v1701_v17 = vpack.c.bf16 %v1060_v16, %v1059_v13 }
  0xb4   :  { %1533 = vmatprep.subr.mxu0 %v1994_v34 }
  0xb7   :  { %1534 = vmatpush3.msra.mxu0 %v1994_v34 }
  0xb8   :  { %1536 = vmatmul.mubr.f32.vlgmr.msra.gmra.mrb[0].mxu0 %v199_v28  ;;  %1674 = vmatprep.subr.bf16.mxu0 %v2014_v59 }
  0xb9   :  { %1538 = vmatprep.mubr.f32.mxu0 %v209_v14  ;;  %1676 = vmatpush3.bf16.msra.mxu0 %v2014_v59  ;;  %v1887_v14 = vmov 0.0|0.0  }
  0xba   :  { %1678 = vmatprep.subr.bf16.mxu0 %v2016_v60  ;;  %1697 = vmatprep.subr.bf16.mxu1 %v1887_v14 }
  0xbc   :  { %1539 = vmatmul.mubr.f32.gmra.mrb[2].mxu0 %v219_v31  ;;  %v1713_v31 = vpack.c.bf16 %v1068_v30, %v1067_v29  ;;  %v1073_v29 = vld [vmem:[#allocation2 + $0x80] sm:$0xff]  ;;  %v1074_v30 = vld [vmem:[#allocation2 + $0x88] sm:$0xff] }
  0xbd   :  { %1541 = vmatprep.mubr.f32.mxu0 %v229_v40  ;;  %1680 = vmatpush3.bf16.msra.mxu0 %v2016_v60  ;;  %v1722_v32 = vpack.c.bf16 %v1074_v30, %v1073_v29 }
  0xbe   :  { %1682 = vmatprep.subr.bf16.mxu0 %v2018_v61 }
  0xc0   :  { %1542 = vmatmul.mubr.f32.gmra.mrb[4].mxu0 %v239_v43 }
  0xc1   :  { %1684 = vmatpush3.bf16.msra.mxu0 %v2018_v61  ;;  %1558 = vmatprep.mubr.msk.f32.mxu0 %vm92_vm1, %v2025_v4 }
  0xc2   :  { %1556 = vmatprep.subr.mxu0 %v2003_v49 }
  0xc5   :  { %1557 = vmatpush3.msra.mxu0 %v2003_v49 }
  0xc6   :  { %1559 = vmatmul.mubr.msk.f32.vlgmr.msra.gmra.mrb[0].mxu0 %vm92_vm1, %v2041_v12  ;;  %1686 = vmatprep.subr.bf16.mxu0 %v1979_v18 }
  0xc7   :  { %1561 = vmatprep.mubr.msk.f32.mxu0 %vm92_vm1, %v2022_v3  ;;  %1688 = vmatpush3.bf16.msra.mxu0 %v1979_v18 }
  0xc8   :  { %1690 = vmatprep.subr.bf16.mxu0 %v1988_v24 }
  0xca   :  { %1562 = vmatmul.mubr.msk.f32.gmra.mrb[2].mxu0 %vm92_vm1, %v2038_v11 }
  0xcb   :  { %1564 = vmatprep.mubr.msk.f32.mxu0 %vm92_vm1, %v2064_v26  ;;  %1692 = vmatpush3.bf16.msra.mxu0 %v1988_v24 }
  0xcc   :  { %1694 = vmatprep.subr.bf16.mxu0 %v1991_v33 }
  0xce   :  { %1565 = vmatmul.mubr.msk.f32.gmra.mrb[4].mxu0 %vm92_vm1, %v2061_v25 }
  0xcf   :  { %1696 = vmatpush3.bf16.msra.mxu0 %v1991_v33  ;;  %1581 = vmatprep.mubr.msk.f32.mxu0 %vm92_vm1, %v2025_v4 }
  0xd0   :  { %1579 = vmatprep.subr.mxu0 %v1994_v34 }
  0xd3   :  { %1580 = vmatpush3.msra.mxu0 %v1994_v34 }
  0xd4   :  { %1582 = vmatmul.mubr.msk.f32.vlgmr.msra.gmra.mrb[0].mxu0 %vm92_vm1, %v2041_v12  ;;  %v1058_v12 = vld [vmem:[#allocation2 + $0x8] sm:$0xff] }
  0xd5   :  { %1584 = vmatprep.mubr.msk.f32.mxu0 %vm92_vm1, %v2022_v3 }
  0xd8   :  { %1585 = vmatmul.mubr.msk.f32.gmra.mrb[2].mxu0 %vm92_vm1, %v2038_v11  ;;  %v1057_v11 = vld [vmem:[#allocation2] sm:$0xff] }
  0xd9   :  { %1587 = vmatprep.mubr.msk.f32.mxu0 %vm92_vm1, %v2064_v26  ;;  %v1698_v15 = vpack.c.bf16 %v1058_v12, %v1057_v11  ;;  %v1065_v26 = vld [vmem:[#allocation2 + $0x40] sm:$0xff] }
  0xda   :  { %v1710_v28 = vpack.c.bf16 %v1066_v27, %v1065_v26 }
  0xdb   :  { %1699 = vmatpush1.bf16.msra.mxu1 %v1698_v15 }
  0xdc   :  { %1588 = vmatmul.mubr.msk.f32.gmra.mrb[4].mxu0 %vm92_vm1, %v2061_v25  ;;  %1700 = vmatprep.subr.bf16.mxu1 %v1887_v14  ;;  %v1707_v25 = vpack.c.bf16 %v1064_v23, %v1063_v22 }
  0xdf   :  { %1702 = vmatpush1.bf16.msra.mxu1 %v1701_v17 }
  0xe0   :  { %1703 = vmatprep.subr.bf16.mxu1 %v1887_v14 }
  0xe3   :  { %1705 = vmatpush1.bf16.msra.mxu1 %v1704_v21 }
  0xe4   :  { %1706 = vmatprep.subr.bf16.mxu1 %v1887_v14 }
  0xe7   :  { %1708 = vmatpush1.bf16.msra.mxu1 %v1707_v25 }
  0xe8   :  { %1709 = vmatprep.subr.bf16.mxu1 %v1887_v14 }
  0xeb   :  { %1711 = vmatpush1.bf16.msra.mxu1 %v1710_v28 }
  0xec   :  { %1712 = vmatprep.subr.bf16.mxu1 %v1887_v14 }
  0xef   :  { %1714 = vmatpush1.bf16.msra.mxu1 %v1713_v31 }
  0xf0   :  { %1715 = vmatprep.subr.bf16.mxu1 %v1887_v14 }
  0xf3   :  { %1717 = vmatpush1.bf16.msra.mxu1 %v1716_v36 }
  0xf4   :  { %1718 = vmatprep.subr.bf16.mxu1 %v1887_v14 }
  0xf7   :  { %1720 = vmatpush1.bf16.msra.mxu1 %v1719_v39 }
  0xf8   :  { %1721 = vmatprep.subr.bf16.mxu1 %v1887_v14 }
  0xfb   :  { %1723 = vmatpush1.bf16.msra.mxu1 %v1722_v32 }
  0xfc   :  { %1724 = vmatprep.subr.bf16.mxu1 %v1887_v14 }
 0x177   :  { %v1468_v18 = vpop.f32.mrb[0].mxu1 }
 0x178   :  { %v193_v24 = vpop.f32.mrb[1].mxu1 }
 0x17b   :  { %v1471_v33 = vpop.f32.mrb[2].mxu1 }
 0x17c   :  { %v213_v41 = vpop.f32.mrb[3].mxu1 }
 0x17f   :  { %v1474_v34 = vpop.f32.mrb[4].mxu1 }
 0x180   :  { %v233_v48 = vpop.f32.mrb[5].mxu1 }
 0x1a7   :  { %v1583_v49 = vpop.f32.mrb[0].mxu0 }
 0x1a8   :  { %v2136_v50 = vadd.f32 %v1583_v49, %v1468_v18  ;;  %v820_v51 = vpop.f32.mrb[1].mxu0 }
 0x1a9   :  { %v2138_v52 = vadd.f32 %v820_v51, %v193_v24 }
 0x1aa   :  { %v855_v53 = vmul.f32 %v2136_v50, %v2136_v50 }
 0x1ab   :  { %v1586_v54 = vpop.f32.mrb[2].mxu0  ;;  %v854_v55 = vmul.f32 %v2138_v52, %v2138_v52 }
 0x1ac   :  { %v2144_v56 = vadd.f32 %v1586_v54, %v1471_v33  ;;  %v832_v57 = vpop.f32.mrb[3].mxu0  ;;  %v864_v58 = vsel %vm860_vm8, %v855_v53, 0.0 }
 0x1ad   :  { %v2147_v59 = vadd.f32 %v832_v57, %v213_v41  ;;  %865 = vadd.xlane.f32.xlu1 %v864_v58  ;;  %v861_v60 = vsel %vm860_vm8, %v854_v55, 0.0 }
 0x1ae   :  { %862 = vadd.xlane.f32.xlu0 %v861_v60  ;;  %v857_v5 = vmul.f32 %v2144_v56, %v2144_v56 }
 0x1af   :  { %v1589_v61 = vpop.f32.mrb[4].mxu0  ;;  %v856_v63 = vmul.f32 %v2147_v59, %v2147_v59 }
 0x1b0   :  { %v2152_v0 = vadd.f32 %v1589_v61, %v1474_v34  ;;  %v844_v1 = vpop.f32.mrb[5].mxu0  ;;  %v870_v7 = vsel %vm860_vm8, %v857_v5, 0.0 }
 0x1b1   :  { %v2154_v3 = vadd.f32 %v844_v1, %v233_v48  ;;  %v867_v4 = vsel %vm860_vm8, %v856_v63, 0.0 }
 0x1b2   :  { %868 = vadd.xlane.f32.xlu0 %v867_v4  ;;  %v859_v9 = vmul.f32 %v2152_v0, %v2152_v0 }
 0x1b3   :  { %v858_v6 = vmul.f32 %v2154_v3, %v2154_v3 }
 0x1b4   :  { %v876_v10 = vsel %vm860_vm8, %v859_v9, 0.0 }
 0x1b5   :  { %v873_v8 = vsel %vm860_vm8, %v858_v6, 0.0 }
 0x1b6   :  { %871 = vadd.xlane.f32.xlu0 %v870_v7  ;;  %874 = vadd.xlane.f32.xlu1 %v873_v8 }
 0x1ba   :  { %877 = vadd.xlane.f32.xlu0 %v876_v10 }
 0x23a   :  { %v866_v40 = vpop.xlane.xlu1 %865 }
 0x23b   :  { %1810 = vrsqrt.f32 %v866_v40  ;;  %v863_v43 = vpop.xlane.xlu0 %862  ;;  %vm888_vm9 = vcmp.eq.f32.partialorder %v866_v40, inf  ;;  %vm890_vm10 = vcmp.eq.f32.partialorder %v866_v40, 0.0  ;;  %v891_v24 = vand.u32 2147483648, %v866_v40 }
 0x23c   :  { %1812 = vrsqrt.f32 %v863_v43  ;;  %vm881_vm11 = vcmp.eq.f32.partialorder %v863_v43, inf  ;;  %v884_v48 = vand.u32 2147483648, %v863_v43  ;;  %vm883_vm12 = vcmp.eq.f32.partialorder %v863_v43, 0.0 }
 0x23f   :  { %v869_v42 = vpop.xlane.xlu0 %868 }
 0x240   :  { %1814 = vrsqrt.f32 %v869_v42  ;;  %vm895_vm13 = vcmp.eq.f32.partialorder %v869_v42, inf  ;;  %v898_v60 = vand.u32 2147483648, %v869_v42  ;;  %vm897_vm14 = vcmp.eq.f32.partialorder %v869_v42, 0.0 }
 0x243   :  { %v872_v44 = vpop.xlane.xlu0 %871  ;;  %v875_v45 = vpop.xlane.xlu1 %874 }
 0x244   :  { %1816 = vrsqrt.f32 %v872_v44  ;;  %vm902_vm15 = vcmp.eq.f32.partialorder %v872_v44, inf  ;;  %vm904_vm0 = vcmp.eq.f32.partialorder %v872_v44, 0.0  ;;  %v905_v7 = vand.u32 2147483648, %v872_v44 }
 0x245   :  { %v1811_v46 = vpop.eup %1810  ;;  %1818 = vrsqrt.f32 %v875_v45  ;;  %vm909_vm1 = vcmp.eq.f32.partialorder %v875_v45, inf  ;;  %v912_v10 = vand.u32 2147483648, %v875_v45  ;;  %vm911_vm2 = vcmp.eq.f32.partialorder %v875_v45, 0.0 }
 0x246   :  { %v1813_v47 = vpop.eup %1812  ;;  %v887_v18 = vmul.f32 %v1811_v46, %v866_v40 }
 0x247   :  { %v880_v33 = vmul.f32 %v1813_v47, %v863_v43  ;;  %v878_v41 = vpop.xlane.xlu0 %877 }
 0x248   :  { %v889_v34 = vsel %vm888_vm9, %v866_v40, %v887_v18  ;;  %1820 = vrsqrt.f32 %v878_v41  ;;  %vm916_vm3 = vcmp.eq.f32.partialorder %v878_v41, inf  ;;  %v919_v20 = vand.u32 2147483648, %v878_v41 }
 0x249   :  { %v892_v49 = vsel %vm890_vm10, %v891_v24, %v889_v34  ;;  %v882_v51 = vsel %vm881_vm11, %v863_v43, %v880_v33  ;;  %vm918_vm4 = vcmp.eq.f32.partialorder %v878_v41, 0.0  ;;  %vm986_vm9 = vcmask 1045504   ;;  %v1075_v43 = vld [vmem:[#allocation2 + $0x90] sm:$0xff] }
 0x24a   :  { %v1815_v53 = vpop.eup %1814  ;;  %v928_v54 = vmax.f32 %v892_v49, 1e-12  ;;  %v885_v55 = vsel %vm883_vm12, %v884_v48, %v882_v51  ;;  %vm922_vm5 = vcmp.gt.f32.partialorder %v892_v49, 5.0  ;;  %vm963_vm12 = vcmask 1046528  }
 0x24b   :  { %v927_v57 = vmax.f32 %v885_v55, 1e-12  ;;  %v894_v58 = vmul.f32 %v1815_v53, %v869_v42  ;;  %vm921_vm6 = vcmp.gt.f32.partialorder %v885_v55, 5.0 }
 0x24c   :  { %1822 = vrcp.f32 %v928_v54 }
 0x24d   :  { %1824 = vrcp.f32 %v927_v57  ;;  %v896_v61 = vsel %vm895_vm13, %v869_v42, %v894_v58  ;;  %v1076_v42 = vld [vmem:[#allocation2 + $0x98] sm:$0xff] }
 0x24e   :  { %v1817_v63 = vpop.eup %1816  ;;  %v899_v1 = vsel %vm897_vm14, %v898_v60, %v896_v61  ;;  %v1725_v18 = vpack.c.bf16 %v1076_v42, %v1075_v43  ;;  %vm1009_vm14 = vcmask 1044480  }
 0x24f   :  { %v1819_v4 = vpop.eup %1818  ;;  %v929_v5 = vmax.f32 %v899_v1, 1e-12  ;;  %v901_v6 = vmul.f32 %v1817_v63, %v872_v44  ;;  %vm923_vm10 = vcmp.gt.f32.partialorder %v899_v1, 5.0 }
 0x250   :  { %v908_v8 = vmul.f32 %v1819_v4, %v875_v45  ;;  %1726 = vmatpush1.bf16.msra.mxu1 %v1725_v18 }
 0x251   :  { %1826 = vrcp.f32 %v929_v5  ;;  %v903_v9 = vsel %vm902_vm15, %v872_v44, %v901_v6  ;;  %1727 = vmatprep.subr.bf16.mxu1 %v1887_v14 }
 0x252   :  { %v1821_v11 = vpop.eup %1820  ;;  %v2175_v12 = vsel %vm904_vm0, %v905_v7, %v903_v9  ;;  %v910_v13 = vsel %vm909_vm1, %v875_v45, %v908_v8  ;;  %vm1047_vm0 = vcmask 523264   ;;  %vm1052_vm1 = vcmask 785408  }
 0x253   :  { %v930_v15 = vmax.f32 %v2175_v12, 1e-12  ;;  %v2178_v16 = vsel %vm911_vm2, %v912_v10, %v910_v13  ;;  %v915_v17 = vmul.f32 %v1821_v11, %v878_v41  ;;  %vm924_vm11 = vcmp.gt.f32.partialorder %v2175_v12, 5.0 }
 0x254   :  { %v931_v19 = vmax.f32 %v2178_v16, 1e-12  ;;  %vm925_vm13 = vcmp.gt.f32.partialorder %v2178_v16, 5.0 }
 0x255   :  { %1828 = vrcp.f32 %v930_v15  ;;  %v917_v21 = vsel %vm916_vm3, %v878_v41, %v915_v17 }
 0x256   :  { %v1823_v22 = vpop.eup %1822  ;;  %1830 = vrcp.f32 %v931_v19  ;;  %v2181_v23 = vsel %vm918_vm4, %v919_v20, %v917_v21  ;;  %vm1237_vm4 = vcmask 1041409  }
 0x257   :  { %v1825_v25 = vpop.eup %1824  ;;  %v936_v26 = vmul.f32 5.0, %v1823_v22  ;;  %v932_v27 = vmax.f32 %v2181_v23, 1e-12  ;;  %vm926_vm15 = vcmp.gt.f32.partialorder %v2181_v23, 5.0 }
 0x258   :  { %v934_v28 = vmul.f32 5.0, %v1825_v25 }
 0x259   :  { %v946_v31 = vsel %vm922_vm5, %v936_v26, 1.0  ;;  %1832 = vrcp.f32 %v932_v27 }
 0x25a   :  { %v2185_v35 = vmul.f32 %v2136_v50, %v946_v31  ;;  %v945_v36 = vsel %vm921_vm6, %v934_v28, 1.0 }
 0x25b   :  { %v1827_v37 = vpop.eup %1826  ;;  %v2188_v38 = vmul.f32 %v2138_v52, %v945_v36 }
 0x25c   :  { %v938_v39 = vmul.f32 5.0, %v1827_v37  ;;  %v1034_v40 = vrot.slane %v2185_v35, 4  ;;  %v988_v50 = vrot.slane %v2185_v35, 2  ;;  %v965_v45 = vrot.slane %v2185_v35, 1 }
 0x25d   :  { %v1033_v44 = vrot.slane %v2188_v38, 4  ;;  %v987_v52 = vrot.slane %v2188_v38, 2  ;;  %v964_v47 = vrot.slane %v2188_v38, 1  ;;  %v1010_v49 = vrot.slane %v2188_v38, 3 }
 0x25e   :  { %v947_v46 = vsel %vm923_vm10, %v938_v39, 1.0  ;;  %v1011_v51 = vrot.slane %v2185_v35, 3 }
 0x25f   :  { %v1829_v24 = vpop.eup %1828  ;;  %v953_v33 = vmul.f32 %v2147_v59, %v947_v46  ;;  %v1035_v41 = vsel %vm1032_vm7, %v1033_v44, %v1034_v40  ;;  %v989_v58 = vsel %vm986_vm9, %v987_v52, %v988_v50  ;;  %v966_v60 = vsel %vm963_vm12, %v964_v47, %v965_v45 }
 0x260   :  { %v1831_v34 = vpop.eup %1830  ;;  %v940_v48 = vmul.f32 5.0, %v1829_v24  ;;  %1350 = vmatprep.mubr.msk.f32.mxu1 %vm860_vm8, %v1035_v41 }
 0x261   :  { %v942_v53 = vmul.f32 5.0, %v1831_v34  ;;  %v990_v54 = vrot.slane %v953_v33, 2  ;;  %v967_v55 = vrot.slane %v953_v33, 1  ;;  %v1013_v59 = vrot.slane %v953_v33, 3 }
 0x262   :  { %v948_v57 = vsel %vm924_vm11, %v940_v48, 1.0  ;;  %v1036_v61 = vrot.slane %v953_v33, 4 }
 0x263   :  { %v1833_v63 = vpop.eup %1832  ;;  %v2208_v1 = vmul.f32 %v2144_v56, %v948_v57  ;;  %v949_v4 = vsel %vm925_vm13, %v942_v53, 1.0  ;;  %v991_v5 = vsel %vm986_vm9, %v988_v50, %v990_v54  ;;  %v968_v6 = vsel %vm963_vm12, %v965_v45, %v967_v55 }
 0x264   :  { %v2215_v7 = vmul.f32 %v2154_v3, %v949_v4  ;;  %v1800_v8 = vpack.i.bf16 %v991_v5, %v989_v58  ;;  %v1795_v9 = vpack.i.bf16 %v968_v6, %v966_v60  ;;  %v1014_v10 = vsel %vm1009_vm14, %v1011_v51, %v1013_v59  ;;  %v1212_v4 = vld [vmem:[%s2342_s4 + $0x8] sm:$0xff]  ;;  %v1213_v6 = vld [vmem:[%s2342_s4 + $0x10] sm:$0xff] }
 0x265   :  { %v992_v11 = vrot.slane %v2208_v1, 2  ;;  %v944_v12 = vmul.f32 5.0, %v1833_v63  ;;  %v1012_v3 = vsel %vm1009_vm14, %v1010_v49, %v1011_v51  ;;  %v1037_v15 = vsel %vm1032_vm7, %v1034_v40, %v1036_v61 }
 0x266   :  { %1801 = vrot.lane.b32.xlu0 %v1800_v8, %s1888_s0  ;;  %1796 = vrot.lane.b32.xlu1 %v1795_v9, %s1889_s1  ;;  %v993_v56 = vrot.slane %v2215_v7, 2  ;;  %v1805_v16 = vpack.i.bf16 %v1014_v10, %v1012_v3  ;;  %v970_v20 = vrot.slane %v2215_v7, 1  ;;  %v969_v21 = vrot.slane %v2208_v1, 1  ;;  %v1215_v9 = vld [vmem:[%s2342_s4 + $0x20] sm:$0xff]  ;;  %v1216_v10 = vld [vmem:[%s2342_s4 + $0x28] sm:$0xff] }
 0x267   :  { %v950_v13 = vsel %vm926_vm15, %v944_v12, 1.0  ;;  %v1039_v23 = vrot.slane %v2215_v7, 4  ;;  %v1016_v26 = vrot.slane %v2215_v7, 3  ;;  %v1015_v30 = vrot.slane %v2208_v1, 3  ;;  %v1217_v12 = vld [vmem:[%s2342_s4 + $0x30] sm:$0xff] }
 0x268   :  { %v956_v17 = vmul.f32 %v2152_v0, %v950_v13  ;;  %v994_v19 = vsel %vm986_vm9, %v992_v11, %v993_v56  ;;  %v971_v28 = vsel %vm963_vm12, %v969_v21, %v970_v20  ;;  %v1038_v48 = vrot.slane %v2208_v1, 4  ;;  %v1219_v13 = vld [vmem:[%s2342_s4 + $0x40] sm:$0xff] }
 0x269   :  { %v1017_v32 = vsel %vm1009_vm14, %v1015_v30, %v1016_v26  ;;  %v1734_v11 = vpack.c.bf16 %v1216_v10, %v1215_v9  ;;  %v1223_v21 = vld [vmem:[%s2342_s4 + $0x60] sm:$0xff] }
 0x26a   :  { %1806 = vrot.lane.b32.xlu1 %v1805_v16, %s1890_s17  ;;  %1001 = vrot.lane.b32.xlu0 %v994_v19, %s1888_s0  ;;  %v972_v22 = vrot.slane %v956_v17, 1  ;;  %v1041_v25 = vrot.slane %v956_v17, 4  ;;  %v1018_v29 = vrot.slane %v956_v17, 3  ;;  %v995_v36 = vrot.slane %v956_v17, 2  ;;  %v1221_v17 = vld [vmem:[%s2342_s4 + $0x50] sm:$0xff]  ;;  %v1222_v19 = vld [vmem:[%s2342_s4 + $0x58] sm:$0xff] }
 0x26b   :  { %v1040_v55 = vsel %vm1032_vm7, %v1038_v48, %v1039_v23 }
 0x26c   :  { %v1042_v27 = vsel %vm1032_vm7, %v1039_v23, %v1041_v25  ;;  %v973_v0 = vsel %vm963_vm12, %v970_v20, %v972_v22  ;;  %v1019_v31 = vsel %vm1009_vm14, %v1016_v26, %v1018_v29  ;;  %v996_v37 = vsel %vm986_vm9, %v993_v56, %v995_v36  ;;  %v1218_v56 = vld [vmem:[%s2342_s4 + $0x38] sm:$0xff]  ;;  %v1224_v22 = vld [vmem:[%s2342_s4 + $0x68] sm:$0xff]  ;;  %v1225_v25 = vld [vmem:[%s2342_s4 + $0x70] sm:$0xff] }
 0x26d   :  { %v1737_v3 = vpack.c.bf16 %v1218_v56, %v1217_v12  ;;  %v1743_v20 = vpack.c.bf16 %v1222_v19, %v1221_v17  ;;  %v1746_v23 = vpack.c.bf16 %v1224_v22, %v1223_v21  ;;  %v1226_v26 = vld [vmem:[%s2342_s4 + $0x78] sm:$0xff]  ;;  %v1354_v29 = vld [vmem:[%s2344_s6] ss:$0 sm:$0xff] }
 0x26e   :  { %980 = vrot.lane.b32.xlu0 %v973_v0, %s1889_s1  ;;  %978 = vrot.lane.b32.xlu1 %v971_v28, %s1889_s1  ;;  %v1171_v0 = vshrl.u32 %v47_v62, 7 }
 0x270   :  { %v1172_v28 = vadd.s32 8, %v1171_v0  ;;  %vm1178_vm2 = vcmp.lt.s32.totalorder %v1171_v0, %v1354_v29 }
 0x272   :  { %1026 = vrot.lane.b32.xlu0 %v1019_v31, %s1890_s17  ;;  %1024 = vrot.lane.b32.xlu1 %v1017_v32, %s1890_s17  ;;  %vm1179_vm3 = vcmp.lt.s32.totalorder %v1172_v28, %v1354_v29  ;;  %v1892_v32 = vmov -1e+30  }
 0x273   :  { %v1180_v36 = vsel %vm1178_vm2, 0.0, %v1892_v32 }
 0x276   :  { %1003 = vrot.lane.b32.xlu1 %v996_v37, %s1888_s0  ;;  %v1181_v37 = vsel %vm1179_vm3, 0.0, %v1892_v32 }
 0x2d8   :  { %v1802_v39 = vpop.permute.xlu0 %1801  ;;  %v1797_v40 = vpop.permute.xlu1 %1796 }
 0x2d9   :  { %v1798_v43 = vunpack.i.l.bf16 %v1797_v40  ;;  %v1803_v42 = vunpack.i.l.bf16 %v1802_v39  ;;  %v1799_v44 = vunpack.i.h.bf16 %v1797_v40  ;;  %v1804_v47 = vunpack.i.h.bf16 %v1802_v39 }
 0x2db   :  { %v1043_v50 = vsel %vm860_vm8, %v2188_v38, %v1798_v43  ;;  %v1044_v41 = vsel %vm860_vm8, %v2185_v35, %v1799_v44 }
 0x2dc   :  { %v1807_v45 = vpop.permute.xlu1 %1806  ;;  %v1002_v46 = vpop.permute.xlu0 %1001  ;;  %v1048_v18 = vsel %vm1047_vm0, %v1043_v50, %v1803_v42  ;;  %v1049_v38 = vsel %vm1047_vm0, %v1044_v41, %v1804_v47 }
 0x2dd   :  { %v1808_v52 = vunpack.i.l.bf16 %v1807_v45  ;;  %v1809_v24 = vunpack.i.h.bf16 %v1807_v45 }
 0x2df   :  { %v1053_v33 = vsel %vm1052_vm1, %v1048_v18, %v1808_v52  ;;  %v1054_v53 = vsel %vm1052_vm1, %v1049_v38, %v1809_v24 }
 0x2e0   :  { %v979_v34 = vpop.permute.xlu1 %978  ;;  %1150 = vmatmul.mubr.f32.vlgmr.msra.gmra.mrb[6].mxu1 %v1053_v33  ;;  %v981_v49 = vpop.permute.xlu0 %980 }
 0x2e1   :  { %1351 = vmatprep.mubr.msk.f32.mxu1 %vm860_vm8, %v1037_v15  ;;  %v1045_v51 = vsel %vm860_vm8, %v2208_v1, %v979_v34  ;;  %v1046_v57 = vsel %vm860_vm8, %v2215_v7, %v981_v49  ;;  %v1211_v1 = vld [vmem:[%s2342_s4] sm:$0xff]  ;;  %v1214_v7 = vld [vmem:[%s2342_s4 + $0x18] sm:$0xff]  ;;  %v1220_v15 = vld [vmem:[%s2342_s4 + $0x48] sm:$0xff] }
 0x2e2   :  { %v1050_v35 = vsel %vm1047_vm0, %v1045_v51, %v1002_v46  ;;  %v1728_v5 = vpack.c.bf16 %v1212_v4, %v1211_v1  ;;  %v1731_v8 = vpack.c.bf16 %v1214_v7, %v1213_v6  ;;  %v1740_v16 = vpack.c.bf16 %v1220_v15, %v1219_v13 }
 0x2e4   :  { %v1025_v54 = vpop.permute.xlu1 %1024  ;;  %1155 = vmatmul.mubr.f32.gmra.mrb[8].mxu1 %v1054_v53  ;;  %v1027_v60 = vpop.permute.xlu0 %1026 }
 0x2e5   :  { %1352 = vmatprep.mubr.msk.f32.mxu1 %vm860_vm8, %v1040_v55  ;;  %v1055_v59 = vsel %vm1052_vm1, %v1050_v35, %v1025_v54  ;;  %1729 = vmatpush3.bf16.msra.mxu1 %v1728_v5  ;;  %v1355_v54 = vld [vmem:[%s2341_s3] ss:$0 sm:$0xff]  ;;  %s1856_s3 = scalar_lea.vmem %s1318_s28, 32 }
 0x2e6   :  { %1730 = vmatprep.subr.bf16.mxu1 %v1887_v14  ;;  %p1857_p8 = scmp.ne.s32.totalorder %s1318_s28, %s1856_s3  ;;  %p1862_p10 = scmp.lt.s32.totalorder %s1856_s3, %s1856_s3 }
 0x2e8   :  { %v1004_v58 = vpop.permute.xlu1 %1003  ;;  %1160 = vmatmul.mubr.f32.gmra.mrb[10].mxu1 %v1055_v59  ;;  %p1863_p11 = por %p1862_p10, %p1861_p9 }
 0x2e9   :  { %v1051_v61 = vsel %vm1047_vm0, %v1046_v57, %v1004_v58  ;;  %1353 = vmatprep.mubr.msk.f32.mxu1 %vm860_vm8, %v1042_v27  ;;  %1732 = vmatpush3.bf16.msra.mxu1 %v1731_v8  ;;  %vm1891_vm8 = vmmov 0   ;;  %v1749_v27 = vpack.c.bf16 %v1226_v26, %v1225_v25 }
 0x2ea   :  { %v1056_v63 = vsel %vm1052_vm1, %v1051_v61, %v1027_v60  ;;  %1733 = vmatprep.subr.bf16.mxu1 %v1887_v14  ;;  %p1864_p12 = pnand %p1863_p11, %p1857_p8 }
 0x2ec   :  { %1165 = vmatmul.mubr.f32.gmra.mrb[12].mxu1 %v1056_v63  ;;  %v1356_v63 = vld [vmem:[%s2343_s5] ss:$0 sm:$0xff] }
 0x2ed   :  { %1735 = vmatpush3.bf16.msra.mxu1 %v1734_v11  ;;  %1622 = vmatprep.mubr.msk.f32.mxu1 %vm1891_vm8, %v1886_v2 }
 0x2ee   :  { %1736 = vmatprep.subr.bf16.mxu1 %v1887_v14 }
 0x2f1   :  { %1738 = vmatpush3.bf16.msra.mxu1 %v1737_v3 }
 0x2f2   :  { %1739 = vmatprep.subr.bf16.mxu1 %v1887_v14 }
 0x2f5   :  { %1741 = vmatpush3.bf16.msra.mxu1 %v1740_v16 }
 0x2f6   :  { %1742 = vmatprep.subr.bf16.mxu1 %v1887_v14 }
 0x2f9   :  { %1744 = vmatpush3.bf16.msra.mxu1 %v1743_v20 }
 0x2fa   :  { %1745 = vmatprep.subr.bf16.mxu1 %v1887_v14 }
 0x2fd   :  { %1747 = vmatpush3.bf16.msra.mxu1 %v1746_v23 }
 0x2fe   :  { %1748 = vmatprep.subr.bf16.mxu1 %v1887_v14 }
 0x301   :  { %1750 = vmatpush3.bf16.msra.mxu1 %v1749_v27 }
 0x3b3   :  { %v1151_v30 = vpop.f32.mrb[6].mxu1 }
 0x3b4   :  { %v1153_v31 = vpop.f32.mrb[7].mxu1  ;;  %v1182_v39 = vadd.f32 %v1180_v36, %v1151_v30 }
 0x3b7   :  { %v1156_v2 = vpop.f32.mrb[8].mxu1 }
 0x3b8   :  { %v1183_v40 = vadd.f32 %v1181_v37, %v1156_v2  ;;  %v1158_v43 = vpop.f32.mrb[9].mxu1 }
 0x3ba   :  { %v1186_v14 = vmax.f32 %v1182_v39, %v1183_v40 }
 0x3bb   :  { %v1161_v42 = vpop.f32.mrb[10].mxu1 }
 0x3bc   :  { %v1187_v44 = vrot.slane %v1186_v14, 4  ;;  %v1163_v62 = vpop.f32.mrb[11].mxu1  ;;  %v1184_v52 = vadd.f32 %v1180_v36, %v1161_v42 }
 0x3be   :  { %v1188_v50 = vmax.f32 %v1186_v14, %v1187_v44 }
 0x3bf   :  { %v1166_v45 = vpop.f32.mrb[12].mxu1 }
 0x3c0   :  { %v1189_v46 = vrot.slane %v1188_v50, 2  ;;  %v1185_v47 = vadd.f32 %v1181_v37, %v1166_v45  ;;  %v1168_v18 = vpop.f32.mrb[13].mxu1 }
 0x3c2   :  { %v1193_v24 = vmax.f32 %v1184_v52, %v1185_v47  ;;  %v1190_v33 = vmax.f32 %v1188_v50, %v1189_v46 }
 0x3c4   :  { %v1194_v41 = vrot.slane %v1193_v24, 4  ;;  %v1191_v48 = vrot.slane %v1190_v33, 1 }
 0x3c6   :  { %v1195_v34 = vmax.f32 %v1193_v24, %v1194_v41  ;;  %v1192_v51 = vmax.f32 %v1190_v33, %v1191_v48 }
 0x3c8   :  { %v1196_v38 = vrot.slane %v1195_v34, 2  ;;  %v1207_v35 = vadd.f32 %v1355_v54, %v1192_v51 }
 0x3ca   :  { %v1197_v49 = vmax.f32 %v1195_v34, %v1196_v38  ;;  %v1209_v58 = vmax.f32 %v1207_v35, 0.0 }
 0x3cc   :  { %v1198_v53 = vrot.slane %v1197_v49, 1 }
 0x3ce   :  { %v1199_v55 = vmax.f32 %v1197_v49, %v1198_v53 }
 0x3d0   :  { %v1208_v59 = vadd.f32 %v1355_v54, %v1199_v55 }
 0x3d2   :  { %v1210_v57 = vmax.f32 %v1208_v59, 0.0 }
 0x3d4   :  { %v1236_v60 = vrot.slane %v1210_v57, 7 }
 0x3d6   :  { %v1238_v61 = vsel %vm1237_vm4, %v1236_v60, %v1209_v58 }
 0x3d7   :  { %1623 = vmatmul.mubr.f32.vlgmr.msra.gmra.mrb[14].mxu1 %v1238_v61 }
 0x4aa   :  { %v1306_v1 = vpop.f32.mrb[14].mxu1 }
 0x4ab   :  { %v1307_v4 = vadd.f32 %v1356_v63, %v1306_v1  ;;  %v1624_v5 = vpop.f32.mrb[15].mxu1 }
 0x4ad   :  { %1310 = vst [vmem:[#allocation5] sm:$0x3] %v1307_v4 }
 0x4ae   :  { %1867 = shalt.err (!%p1864_p12)
}
 0x4af   :  { %s1868_s8 = scalar_lea.hbm %s2345_s7, 32 }
 0x4b0   :  { %p1869_p13 = scmp.ne.s32.totalorder %s2345_s7, %s1868_s8  ;;  %p1872_p0 = scmp.lt.u32.totalorder %s1868_s8, %s2345_s7 }
 0x4b2   :  { %p1874_p1 = pnand %p1872_p0, %p1869_p13 }
 0x4b4   :  { %1877 = shalt.err (!%p1874_p1)
}
 0x4b5   :  { %1320 = dma.vmem_to_hbm [thread:$0]  %s1318_s28, 32, %s2345_s7, [#allocation4]  }
 0x4b6   :  { %1880 = dma.done.wait [#allocation4], 32  }
 0x4b7   :  { %1881 = vsyncadd [#allocation4], 4294967264 }
 0x4b8   :  { %1324 = vsyncpa [#allocation3], 1 }
 0x4b9   :  { %1325 = vsyncpa [#allocation4], 1 }

</bundles_post_ra>
